<compile_context>
chip_gen: v7x
topology: tpu7x:2x2x1
jax: 0.10.0
libtpu: 0.0.40
codegen_flags: <defaults>
</compile_context>

<pallas_src>
import jax
import jax.numpy as jnp
from jax.experimental import pallas as pl
from jax.experimental.pallas import tpu as pltpu


# -----------------------------------------------------------------------------
# Kernel
# -----------------------------------------------------------------------------
def _uav_disc_kernel(x_ref, w1_ref, b1_ref, w2_ref, b2_ref, o_ref):
    # x tile: (TB, D) f32 -> cast to bf16 *inside* the kernel (no extra HBM pass).
    xb = x_ref[...].astype(jnp.bfloat16)

    # h_T[h, b] = sum_d W1[h, d] * x[b, d]  -> (H, TB): batch on the lane axis.
    # (lhs non-transposed, rhs contracted on its last dim -> MXU A @ B^T path)
    h = jax.lax.dot_general(
        w1_ref[...], xb,
        dimension_numbers=(((1,), (1,)), ((), ())),
        preferred_element_type=jnp.float32)
    h = jnp.maximum(h + b1_ref[...], 0.0)           # bias (H, 1) broadcasts over lanes

    # logits_T = W2 @ h_T -> (S, TB), lane-dense.
    logits = jax.lax.dot_general(
        w2_ref[...], h.astype(jnp.bfloat16),
        dimension_numbers=(((1,), (0,)), ((), ())),
        preferred_element_type=jnp.float32) + b2_ref[...]

    # Numerically stable softmax over the states axis (sublanes, size S).
    m = jnp.max(logits, axis=0, keepdims=True)      # (1, TB)
    e = jnp.exp(logits - m)                         # (S, TB)
    denom = jnp.sum(e, axis=0, keepdims=True)       # (1, TB)
    inv = pl.reciprocal(denom, approx=True)         # EUP slot, ~free
    o_ref[...] = (e * inv).astype(o_ref.dtype)      # dense (S, TB) store


# -----------------------------------------------------------------------------
# Wrapper
# -----------------------------------------------------------------------------
def _tiling_for_device():
    """Generation-aware batch tile and VMEM cap (v7x only has 64 MiB of VMEM)."""
    try:
        vmem_bytes = pltpu.get_tpu_info().vmem_capacity_bytes
    except Exception:
        vmem_bytes = 64 * 1024 * 1024               # conservative (v7x-class) default
    vmem_limit = int(min(96 << 20, max(8 << 20, (vmem_bytes * 3) // 4)))
    # ~1.7 KiB VMEM per batch row: x f32 double buffer (lane-padded to 128) +
    # (S, TB) f32 output double buffer + f32/bf16 intermediates.
    bytes_per_row = 1664
    tb_max = (vmem_limit // 2) // bytes_per_row
    tb_max = max(128, min(16384, (tb_max // 128) * 128))
    return tb_max, vmem_limit


def prepare_params(params):
    """One-time cast/reshape of PyTorch-layout params (hoisted out of the hot path)."""
    w1, b1, w2, b2 = params["w1"], params["b1"], params["w2"], params["b2"]
    H, _ = w1.shape
    S, _ = w2.shape
    return {
        "w1": w1.astype(jnp.bfloat16),                       # (H, D)  == torch weight
        "b1": b1.astype(jnp.float32).reshape(H, 1),          # column vector (lane bcast)
        "w2": w2.astype(jnp.bfloat16),                       # (S, H)
        "b2": b2.astype(jnp.float32).reshape(S, 1),
    }


def uav_state_discriminator_forward(x, params, *, max_rows_per_tile=None):
    """x: [B, input_dim] float32. params: PyTorch-layout dict (raw or prepare_params)."""
    if params["b1"].ndim == 1:          # raw params -> prepare on the fly (convenience)
        params = prepare_params(params)
    w1, b1, w2, b2 = params["w1"], params["b1"], params["w2"], params["b2"]

    B, D = x.shape
    H, Dw = w1.shape
    S = w2.shape[0]
    assert D == Dw, (D, Dw)

    tb_default, vmem_limit = _tiling_for_device()
    tb_max = tb_default if max_rows_per_tile is None else int(max_rows_per_tile)

    if B <= tb_max:
        # Single block: exact fit (block dims == full array dims), no ragged handling.
        tb = B
    else:
        # Multi-tile: lane dim of the (S, TB) output block must be a multiple of 128.
        tb = max(128, (tb_max // 128) * 128)
    n_tiles = pl.cdiv(B, tb)

    out_t = pl.pallas_call(
        _uav_disc_kernel,
        out_shape=jax.ShapeDtypeStruct((S, B), jnp.float32),   # batch-in-lanes layout
        grid=(n_tiles,),
        in_specs=[
            pl.BlockSpec((tb, D), lambda i: (i, 0)),   # x: streamed per batch tile (f32)
            pl.BlockSpec((H, D), lambda i: (0, 0)),    # W1: VMEM-resident (constant idx)
            pl.BlockSpec((H, 1), lambda i: (0, 0)),    # b1
            pl.BlockSpec((S, H), lambda i: (0, 0)),    # W2
            pl.BlockSpec((S, 1), lambda i: (0, 0)),    # b2
        ],
        out_specs=pl.BlockSpec((S, tb), lambda i: (0, i)),     # lane-dense output block
        compiler_params=pltpu.CompilerParams(
            # Independent batch tiles; on v7x consider pltpu.CORE_PARALLEL if one TC idles.
            dimension_semantics=("parallel",),
            vmem_limit_bytes=vmem_limit,
        ),
    )(x, w1, b1, w2, b2)

    # Present (S, B) back as (B, S) to match nn.Softmax(dim=1)'s output layout.
    return out_t.T


# -----------------------------------------------------------------------------
# Init + references
# -----------------------------------------------------------------------------
def init_params(key, input_dim, hidden_size, num_states):
    """PyTorch-layout params with nn.Linear's U(-1/sqrt(fan_in), 1/sqrt(fan_in)) init."""
    ks = jax.random.split(key, 4)

    def uni(k, shape, fan_in):
        bound = 1.0 / jnp.sqrt(float(fan_in))
        return jax.random.uniform(k, shape, jnp.float32, -bound, bound)

    return {
        "w1": uni(ks[0], (hidden_size, input_dim), input_dim),    # (out, in)
        "b1": uni(ks[1], (hidden_size,), input_dim),
        "w2": uni(ks[2], (num_states, hidden_size), hidden_size),
        "b2": uni(ks[3], (num_states,), hidden_size),
    }


def reference_forward_f32(x, params):
    """Pure-JAX f32 reference matching the PyTorch module exactly."""
    h = jnp.maximum(x @ params["w1"].T + params["b1"], 0.0)
    logits = h @ params["w2"].T + params["b2"]
    return jax.nn.softmax(logits, axis=1)


def reference_forward_bf16(x, params):
    """Pure-JAX reference mimicking the kernel's bf16 MXU operands / f32 accumulation."""
    bf = jnp.bfloat16
    h = jax.lax.dot_general(x.astype(bf), params["w1"].astype(bf),
                            dimension_numbers=(((1,), (1,)), ((), ())),
                            preferred_element_type=jnp.float32) + params["b1"]
    h = jnp.maximum(h, 0.0)
    logits = jax.lax.dot_general(h.astype(bf), params["w2"].astype(bf),
                                 dimension_numbers=(((1,), (1,)), ((), ())),
                                 preferred_element_type=jnp.float32) + params["b2"]
    return jax.nn.softmax(logits, axis=1)


def _check(out, x, params):
    ref_bf16 = reference_forward_bf16(x, params)
    ref_f32 = reference_forward_f32(x, params)
    # approx reciprocal in the softmax epilogue -> small abs tolerance vs bf16 reference
    assert jnp.allclose(out, ref_bf16, atol=5e-3, rtol=5e-3), "mismatch vs bf16 reference"
    assert jnp.allclose(out, ref_f32, atol=2e-2, rtol=2e-2), "mismatch vs f32 reference"
    assert jnp.allclose(out.sum(axis=1), 1.0, atol=5e-3), "softmax rows must sum to ~1"


# -----------------------------------------------------------------------------
# Main
# -----------------------------------------------------------------------------
if __name__ == "__main__":
    key = jax.random.PRNGKey(0)
    k_x1, k_x2, k_p = jax.random.split(key, 3)

    # Small shapes consistent with a UAV state discriminator.
    input_dim, hidden_size, num_states = 12, 32, 8
    params = init_params(k_p, input_dim, hidden_size, num_states)
    prepared = prepare_params(params)   # hoisted one-time weight cast/reshape

    # Case 1: small batch -> single exact block (no padding, no ragged handling).
    B1 = 40
    x1 = jax.random.normal(k_x1, (B1, input_dim), jnp.float32)
    out1 = jax.block_until_ready(uav_state_discriminator_forward(x1, prepared))
    assert out1.shape == (B1, num_states), out1.shape
    _check(out1, x1, params)

    # Case 2: multi-tile grid with a ragged last block (300 = 2*128 + 44), exercising
    # the no-pad / no-slice path (OOB rows computed row-wise, OOB writes dropped).
    B2 = 300
    x2 = jax.random.normal(k_x2, (B2, input_dim), jnp.float32)
    out2 = jax.block_until_ready(
        uav_state_discriminator_forward(x2, prepared, max_rows_per_tile=128))
    assert out2.shape == (B2, num_states), out2.shape
    _check(out2, x2, params)

    print("KERNEL_OK")
</pallas_src>

<mosaic_0001>
module attributes {stable_mosaic.version = 11 : i64} {
  func.func @_uav_disc_kernel(%arg0: i32, %arg1: memref<40x12xf32, #tpu.memory_space<vmem>>, %arg2: memref<32x12xbf16, #tpu.memory_space<vmem>>, %arg3: memref<32x1xf32, #tpu.memory_space<vmem>>, %arg4: memref<8x32xbf16, #tpu.memory_space<vmem>>, %arg5: memref<8x1xf32, #tpu.memory_space<vmem>>, %arg6: memref<8x40xf32, #tpu.memory_space<vmem>>) attributes {dimension_semantics = [#tpu.dimension_semantics<parallel>], iteration_bounds = array<i64: 1>, scalar_prefetch = 0 : i64, scratch_operands = 0 : i64, tpu.core_type = #tpu.core_type<tc>, window_params = [{transform_indices = @transform_0, window_bounds = array<i64: 40, 12>}, {pipeline_mode = #tpu.pipeline_mode<synchronous>, transform_indices = @transform_1, window_bounds = array<i64: 32, 12>}, {pipeline_mode = #tpu.pipeline_mode<synchronous>, transform_indices = @transform_2, window_bounds = array<i64: 32, 1>}, {pipeline_mode = #tpu.pipeline_mode<synchronous>, transform_indices = @transform_3, window_bounds = array<i64: 8, 32>}, {pipeline_mode = #tpu.pipeline_mode<synchronous>, transform_indices = @transform_4, window_bounds = array<i64: 8, 1>}, {transform_indices = @transform_5, window_bounds = array<i64: 8, 40>}]} {
    %c0 = arith.constant 0 : index
    %c0_0 = arith.constant 0 : index
    %0 = vector.load %arg1[%c0, %c0_0] : memref<40x12xf32, #tpu.memory_space<vmem>>, vector<40x12xf32>
    %1 = arith.truncf %0 : vector<40x12xf32> to vector<40x12xbf16>
    %c0_1 = arith.constant 0 : index
    %c0_2 = arith.constant 0 : index
    %2 = vector.load %arg2[%c0_1, %c0_2] : memref<32x12xbf16, #tpu.memory_space<vmem>>, vector<32x12xbf16>
    %cst = arith.constant dense<0.000000e+00> : vector<32x40xf32>
    %3 = tpu.matmul %2, %1, %cst {dimension_numbers = #tpu.dot_dimension_numbers<[1], [1], [0], [0], [0, 0, 1, 0], [], []>} : vector<32x12xbf16>, vector<40x12xbf16>, vector<32x40xf32> -> vector<32x40xf32>
    %c0_3 = arith.constant 0 : index
    %c0_4 = arith.constant 0 : index
    %4 = vector.load %arg3[%c0_3, %c0_4] : memref<32x1xf32, #tpu.memory_space<vmem>>, vector<32x1xf32>
    %5 = vector.broadcast %4 : vector<32x1xf32> to vector<32x40xf32>
    %6 = arith.addf %3, %5 : vector<32x40xf32>
    %cst_5 = arith.constant 0.000000e+00 : f32
    %7 = vector.broadcast %cst_5 : f32 to vector<32x40xf32>
    %8 = arith.maximumf %6, %7 : vector<32x40xf32>
    %c0_6 = arith.constant 0 : index
    %c0_7 = arith.constant 0 : index
    %9 = vector.load %arg4[%c0_6, %c0_7] : memref<8x32xbf16, #tpu.memory_space<vmem>>, vector<8x32xbf16>
    %10 = arith.truncf %8 : vector<32x40xf32> to vector<32x40xbf16>
    %cst_8 = arith.constant dense<0.000000e+00> : vector<8x40xf32>
    %11 = tpu.matmul %9, %10, %cst_8 {dimension_numbers = #tpu.dot_dimension_numbers<[1], [0], [0], [1], [0, 0, 1, 1], [], []>} : vector<8x32xbf16>, vector<32x40xbf16>, vector<8x40xf32> -> vector<8x40xf32>
    %c0_9 = arith.constant 0 : index
    %c0_10 = arith.constant 0 : index
    %12 = vector.load %arg5[%c0_9, %c0_10] : memref<8x1xf32, #tpu.memory_space<vmem>>, vector<8x1xf32>
    %13 = vector.broadcast %12 : vector<8x1xf32> to vector<8x40xf32>
    %14 = arith.addf %11, %13 : vector<8x40xf32>
    %cst_11 = arith.constant dense<0xFF800000> : vector<40xf32>
    %15 = vector.multi_reduction <maximumf>, %14, %cst_11 [0] : vector<8x40xf32> to vector<40xf32>
    %16 = vector.shape_cast %15 : vector<40xf32> to vector<1x40xf32>
    %17 = vector.broadcast %16 : vector<1x40xf32> to vector<8x40xf32>
    %18 = arith.subf %14, %17 : vector<8x40xf32>
    %19 = math.exp %18 : vector<8x40xf32>
    %cst_12 = arith.constant dense<0.000000e+00> : vector<40xf32>
    %20 = vector.multi_reduction <add>, %19, %cst_12 [0] : vector<8x40xf32> to vector<40xf32>
    %21 = vector.shape_cast %20 : vector<40xf32> to vector<1x40xf32>
    %22 = tpu.reciprocal %21 {approx = true} : vector<1x40xf32> -> vector<1x40xf32>
    %23 = vector.broadcast %22 : vector<1x40xf32> to vector<8x40xf32>
    %24 = arith.mulf %19, %23 : vector<8x40xf32>
    %c0_13 = arith.constant 0 : index
    %c0_14 = arith.constant 0 : index
    %25 = vector.load %arg6[%c0_13, %c0_14] : memref<8x40xf32, #tpu.memory_space<vmem>>, vector<8x40xf32>
    tpu.vector_store %arg6[%c0_13, %c0_14], %24 {strides = array<i32>} : memref<8x40xf32, #tpu.memory_space<vmem>>, vector<8x40xf32>,
    return
  }
  func.func @transform_0(%arg0: i32) -> (i32, i32) {
    %c0_i32 = arith.constant 0 : i32
    %c0_i32_0 = arith.constant 0 : i32
    return %arg0, %c0_i32 : i32, i32
  }
  func.func @transform_1(%arg0: i32) -> (i32, i32) {
    %c0_i32 = arith.constant 0 : i32
    %c0_i32_0 = arith.constant 0 : i32
    %c0_i32_1 = arith.constant 0 : i32
    return %c0_i32, %c0_i32_0 : i32, i32
  }
  func.func @transform_2(%arg0: i32) -> (i32, i32) {
    %c0_i32 = arith.constant 0 : i32
    %c0_i32_0 = arith.constant 0 : i32
    %c0_i32_1 = arith.constant 0 : i32
    return %c0_i32, %c0_i32_0 : i32, i32
  }
  func.func @transform_3(%arg0: i32) -> (i32, i32) {
    %c0_i32 = arith.constant 0 : i32
    %c0_i32_0 = arith.constant 0 : i32
    %c0_i32_1 = arith.constant 0 : i32
    return %c0_i32, %c0_i32_0 : i32, i32
  }
  func.func @transform_4(%arg0: i32) -> (i32, i32) {
    %c0_i32 = arith.constant 0 : i32
    %c0_i32_0 = arith.constant 0 : i32
    %c0_i32_1 = arith.constant 0 : i32
    return %c0_i32, %c0_i32_0 : i32, i32
  }
  func.func @transform_5(%arg0: i32) -> (i32, i32) {
    %c0_i32 = arith.constant 0 : i32
    %c0_i32_0 = arith.constant 0 : i32
    return %c0_i32, %arg0 : i32, i32
  }
}

</mosaic_0001>

<bundles_post_ra>
// kernel: tpu_custom_call.1
= control target key start
LH: loop header
LB: loop body
LE: loop exit
PB: predicated region body
PF: predicated region fallthrough
CT: control target
= control target key end

     0   :  { %vm68_vm0 = vcmask 97280   ;;  %v295_v5 = vmov 0   ;;  %s391_s0 = inlined_call_operand.vmem [shape: f32[40,12], index: 0, kind: input, shape index: {}]   ;;  %s392_s1 = inlined_call_operand.vmem [shape: bf16[32,12], index: 1, kind: input, shape index: {}]   ;;  %s393_s2 = inlined_call_operand.vmem [shape: f32[32,1], index: 2, kind: input, shape index: {}]   ;;  %s394_s3 = inlined_call_operand.vmem [shape: bf16[8,32], index: 3, kind: input, shape index: {}]   ;;  %s395_s4 = inlined_call_operand.vmem [shape: f32[8,1], index: 4, kind: input, shape index: {}]   ;;  %s396_s5 = inlined_call_operand.hbm [shape: f32[8,40], index: 5, kind: output, shape index: {}]  }
   0x1   :  { %v22_v0 = vld [vmem:[%s391_s0] sm:$0xff]  ;;  %v23_v1 = vld [vmem:[%s391_s0 + $0x8] sm:$0xff]  ;;  %v24_v2 = vld [vmem:[%s391_s0 + $0x10] sm:$0xff]  ;;  %263 = vset.pattern.permute.xlu0 %v295_v5  ;;  %264 = vset.pattern.permute.xlu1 %v295_v5 }
   0x2   :  { %v27_v3 = vpack.c.bf16 %v23_v1, %v22_v0  ;;  %v25_v4 = vld [vmem:[%s391_s0 + $0x18] sm:$0xff]  ;;  %v265_v7 = vld [vmem:[%s392_s1] sm:$0xff]   ;;  %v36_v10 = vld [vmem:[%s393_s2 + $0x10] sm:$0xff] }
   0x3   :  { %v28_v6 = vpack.c.bf16 %v25_v4, %v24_v2  ;;  %v34_v9 = vld [vmem:[%s393_s2] sm:$0xff]  ;;  %244 = vmatprep.mubr.msk.bf16.mxu0 %vm68_vm0, %v265_v7 }
   0x4   :  { %256 = vmatprep.subr.msk.bf16.mxu0 %vm68_vm0, %v27_v3  ;;  %v76_v8 = vsel %vm68_vm0, %v27_v3, 0  ;;  %40 = vperm.xlu0 %263, %v34_v9  }
   0x5   :  { %239 = vmatpush3.bf16.xpose.msra.mxu0 %v76_v8 }
   0x6   :  { %257 = vmatprep.subr.msk.bf16.mxu0 %vm68_vm0, %v28_v6 }
   0x7   :  { %10 = vsyncpa [#allocation3], 0  ;;  %v26_v11 = vld [vmem:[%s391_s0 + $0x20] sm:$0xff]  ;;  %v35_v12 = vld [vmem:[%s393_s2 + $0x8] sm:$0xff]  ;;  %50 = vperm.xlu1 %264, %v36_v10   ;;  %v79_v14 = vsel %vm68_vm0, %v28_v6, 0  ;;  %v296_v19 = vmov 0.0  }
   0x8   :  { %v37_v13 = vld [vmem:[%s393_s2 + $0x18] sm:$0xff]  ;;  %v29_v15 = vpack.c.bf16 %v26_v11, %v26_v11  ;;  %45 = vperm.xlu0 %263, %v35_v12   ;;  %v140_v16 = vld [vmem:[%s395_s4] sm:$0xff]  ;;  %v266_v18 = vld [vmem:[%s392_s1 + $0x8] sm:$0xff]   ;;  %248 = vmatprep.subr.bf16.mxu1 %v296_v19  ;;  %vm297_vm1 = vmmov 0   ;;  %vm146_vm2 = vcmask 261120   ;;  %vm190_vm3 = vcmask 326656  }
   0x9   :  { %252 = vmatprep.mubr.msk.bf16.mxu1 %vm297_vm1, %v296_v19  ;;  %v137_v38 = vld [vmem:[%s394_s3] sm:$0xf]  ;;  %s298_s3 = smov [#allocation2]  }
   0xa   :  { %v82_v17 = vsel %vm68_vm0, %v29_v15, 0  ;;  %s217_s4 = sshll.u32 %s298_s3, 4  ;;  %s218_s4 = int_to_ptr.vmem [resolvable:$true] %s217_s4 }
   0xb   :  { %55 = vperm.xlu1 %264, %v37_v13   ;;  %s271_s16 = scalar_lea.vmem %s218_s4, 128  ;;  %p276_p1 = scmp.lt.s32.totalorder %s218_s4, %s218_s4 }
   0xc   :  { %143 = vperm.xlu0 %263, %v140_v16   ;;  %p272_p0 = scmp.ne.s32.totalorder %s218_s4, %s271_s16  ;;  %p277_p2 = scmp.lt.s32.totalorder %s271_s16, %s271_s16 }
   0xd   :  { %241 = vmatpush3.bf16.xpose.msra.mxu0 %v79_v14 }
   0xe   :  { %258 = vmatprep.subr.msk.bf16.mxu0 %vm68_vm0, %v29_v15  ;;  %p278_p3 = por %p277_p2, %p276_p1 }
  0x10   :  { %p279_p4 = pnand %p278_p3, %p272_p0 }
  0x15   :  { %243 = vmatpush3.bf16.xpose.msra.mxu0 %v82_v17 }
  0x1c   :  { %245 = vmatmul.mubr.msk.bf16.vlgmr.msra.gmra.mrb[0].mxu0 %vm68_vm0, %v266_v18 }
  0x83   :  { %v41_v21 = vpop.permute.xlu0 %40 }
  0x86   :  { %v51_v20 = vpop.permute.xlu1 %50 }
  0x87   :  { %v46_v28 = vpop.permute.xlu0 %45 }
  0x8a   :  { %v56_v23 = vpop.permute.xlu1 %55 }
  0x8b   :  { %v144_v39 = vpop.permute.xlu0 %143 }
  0xef   :  { %v246_v22 = vpop.f32.mrb[0].mxu0 }
  0xf0   :  { %v127_v24 = vadd.f32 %v246_v22, %v51_v20  ;;  %v118_v25 = vpop.f32.mrb[1].mxu0 }
  0xf1   :  { %v119_v26 = vadd.f32 %v118_v25, %v41_v21  ;;  %v247_v27 = vpop.f32.mrb[2].mxu0 }
  0xf2   :  { %v130_v29 = vadd.f32 %v247_v27, %v56_v23  ;;  %v121_v30 = vpop.f32.mrb[3].mxu0  ;;  %v135_v32 = vmax.f32 %v127_v24, 0.0 }
  0xf3   :  { %v122_v31 = vadd.f32 %v121_v30, %v46_v28  ;;  %v133_v34 = vmax.f32 %v119_v26, 0.0 }
  0xf4   :  { %v136_v33 = vmax.f32 %v130_v29, 0.0 }
  0xf5   :  { %v134_v35 = vmax.f32 %v122_v31, 0.0 }
  0xf6   :  { %v139_v36 = vpack.c.bf16 %v136_v33, %v135_v32 }
  0xf7   :  { %v138_v37 = vpack.c.bf16 %v134_v35, %v133_v34 }
  0xf9   :  { %249 = vmatpush3.bf16.msra.mxu1 %v138_v37 }
  0xfa   :  { %250 = vmatprep.subr.bf16.mxu1 %v296_v19 }
  0xfd   :  { %251 = vmatpush3.bf16.msra.mxu1 %v139_v36 }
 0x100   :  { %253 = vmatmul.mubr.msk.bf16.vlgmr.msra.gmra.mrb[0].mxu1 %vm146_vm2, %v137_v38 }
 0x1d3   :  { %v184_v40 = vpop.f32.mrb[0].mxu1 }
 0x1d4   :  { %v185_v41 = vadd.f32 %v184_v40, %v144_v39  ;;  %v254_v42 = vpop.f32.mrb[1].mxu1 }
 0x1d5   :  { %v187_v43 = vpop.f32.mrb[2].mxu1 }
 0x1d6   :  { %v191_v44 = vsel %vm190_vm3, %v185_v41, -inf  ;;  %v255_v45 = vpop.f32.mrb[3].mxu1 }
 0x1d7   :  { %v192_v46 = vrot.slane %v191_v44, 4 }
 0x1d9   :  { %v193_v47 = vmax.f32 %v191_v44, %v192_v46 }
 0x1db   :  { %v194_v48 = vrot.slane %v193_v47, 2 }
 0x1dd   :  { %v195_v49 = vmax.f32 %v193_v47, %v194_v48 }
 0x1df   :  { %v196_v50 = vrot.slane %v195_v49, 1 }
 0x1e1   :  { %v197_v51 = vmax.f32 %v195_v49, %v196_v50 }
 0x1e3   :  { %v198_v52 = vsub.f32 %v185_v41, %v197_v51 }
 0x1e5   :  { %v199_v53 = vmul.f32 1.442695, %v198_v52 }
 0x1e7   :  { %267 = vpow2.f32 %v199_v53 }
 0x1f1   :  { %v268_v54 = vpop.eup %267 }
 0x1f2   :  { %v201_v55 = vsel %vm190_vm3, %v268_v54, 0.0 }
 0x1f3   :  { %v202_v56 = vrot.slane %v201_v55, 4 }
 0x1f5   :  { %v203_v57 = vadd.f32 %v202_v56, %v201_v55 }
 0x1f7   :  { %v204_v58 = vrot.slane %v203_v57, 2 }
 0x1f9   :  { %v205_v59 = vadd.f32 %v204_v58, %v203_v57 }
 0x1fb   :  { %v206_v60 = vrot.slane %v205_v59, 1 }
 0x1fd   :  { %v207_v61 = vadd.f32 %v206_v60, %v205_v59 }
 0x1ff   :  { %269 = vrcp.f32 %v207_v61 }
 0x209   :  { %v270_v62 = vpop.eup %269 }
 0x20a   :  { %v209_v63 = vmul.f32 %v270_v62, %v268_v54 }
 0x20c   :  { %210 = vst.msk [vmem:[#allocation2] sm:$0xff] %vm190_vm3, %v209_v63 }
 0x20d   :  { %282 = shalt.err (!%p279_p4)
}
 0x20e   :  { %s283_s19 = scalar_lea.hbm %s396_s5, 128 }
 0x20f   :  { %p284_p5 = scmp.ne.s32.totalorder %s396_s5, %s283_s19  ;;  %p287_p6 = scmp.lt.u32.totalorder %s283_s19, %s396_s5 }
 0x211   :  { %p289_p7 = pnand %p287_p6, %p284_p5 }
 0x213   :  { %292 = shalt.err (!%p289_p7)
}
 0x214   :  { %220 = dma.vmem_to_hbm [thread:$0]  %s218_s4, 128, %s396_s5, [#allocation3]  }
 0x215   :  { %293 = dma.done.wait [#allocation3], 128  }
 0x216   :  { %294 = vsyncadd [#allocation3], 4294967168 }
 0x217   :  { %224 = vsyncpa [#allocation3], 1 }

</bundles_post_ra>
